<compile_context>
chip_gen: v7x
topology: tpu7x:2x2x1
jax: 0.10.0
libtpu: 0.0.40
codegen_flags: <defaults>
</compile_context>

<pallas_src>
import jax
import jax.numpy as jnp
from jax.experimental import pallas as pl
from jax.experimental.pallas import tpu as pltpu

_LANE = 128


def _conv1x1_relu_kernel(x_ref, w_ref, b_ref, o_ref):
    """Fused 1x1-conv (channel matmul) + bias + ReLU for one (batch-block, hw-tile).

    x_ref: (bn, C_in, thw)   activations; channels on sublanes, pixels on lanes
    w_ref: (C_out, C_in)     full weight slab (constant block index -> VMEM resident)
    b_ref: (C_out, 1)        bias, broadcast across the lane axis
    o_ref: (bn, C_out, thw)  output tile written directly in NCHW layout
    """
    w = w_ref[...]
    b = b_ref[...]
    # bn is a small static int (<= 8); plain unrolled (C_out,C_in)@(C_in,thw)
    # matmuls keep lane-dense stores and avoid any batched-einsum output transpose.
    for i in range(x_ref.shape[0]):
        y = jnp.dot(w, x_ref[i], preferred_element_type=jnp.float32)
        o_ref[i] = jnp.maximum(y + b, 0.0).astype(o_ref.dtype)


def _vmem_capacity_bytes() -> int:
    """Per-core VMEM capacity; conservative 64 MiB fallback (safe on every gen)."""
    try:
        cap = getattr(pltpu.get_tpu_info(), "vmem_capacity_bytes", None)
        if cap:
            return int(cap)
    except Exception:
        pass
    return 64 * 1024 * 1024


def _choose_tiling(N, C_in, C_out, HW, itemsize, budget):
    """Pick (bn, thw) = (#images per grid step, lane tile of H*W)."""
    # Constant per-step VMEM: weight + bias (double-buffered, conservative).
    const = 2 * itemsize * (C_out * C_in + C_out * _LANE)
    # Double-buffered x + out bytes per 128-wide lane unit of one image.
    per_unit = 2 * itemsize * (C_in + C_out) * _LANE
    max_units = max(1, (budget - const) // per_unit)

    if HW < _LANE:
        # Tiny spatial extent: one full-width (masked-store) block.
        thw = HW
        used_units = 1
    else:
        # Largest 128-multiple tile fitting the budget; the cdiv grid masks at
        # most one partial edge block, keeping every other store lane-dense.
        thw = int(min(HW // _LANE, max_units)) * _LANE
        used_units = thw // _LANE

    # Fold several batch images per step only once a single tile spans H*W
    # (amortizes the ~0.35us/step grid overhead, enlarges DMA bursts).
    bn = 1
    if thw >= HW:
        bn = int(min(N, 8, max(1, max_units // used_units)))
        while N % bn:
            bn -= 1

    # Keep >= 2 grid steps when possible so v7x's second TensorCore has work.
    def n_steps(bn_, thw_):
        return (N // bn_) * (-(-HW // thw_))

    if n_steps(bn, thw) < 2:
        if bn > 1:
            bn = max(1, bn // 2)
            while N % bn:
                bn -= 1
        elif HW > _LANE and thw > _LANE:
            thw = max(_LANE, ((thw // 2) // _LANE) * _LANE)
    return bn, thw


@jax.jit
def middle_forward(x_nchw, weight, bias):
    """Forward pass of `Middle` on NCHW input.

    x_nchw: (N, C_in, H, W)
    weight: (C_out, C_in, 1, 1)   (PyTorch Conv2d weight layout)
    bias:   (C_out,)
    returns (N, C_out, H, W)
    """
    N, C_in, H, W = x_nchw.shape
    C_out = weight.shape[0]
    HW = H * W
    itemsize = jnp.dtype(x_nchw.dtype).itemsize

    # Pure reshapes only -- no NCHW<->NHWC transposes, no extra HBM passes.
    x3d = x_nchw.reshape(N, C_in, HW)
    w2d = weight.reshape(C_out, C_in)
    b2d = bias.reshape(C_out, 1)

    vmem_cap = _vmem_capacity_bytes()
    budget = (vmem_cap * 3) // 4                     # ~48 MiB v7x, ~96 MiB v5e/v6e
    bn, thw = _choose_tiling(N, C_in, C_out, HW, itemsize, budget)
    grid = (N // bn, pl.cdiv(HW, thw))

    # Real per-step footprint (x/out tiles + weight + bias, double-buffered),
    # with ~25% headroom; capped at 90% of the per-core capacity.
    footprint = 2 * itemsize * (bn * (C_in + C_out) * thw + C_out * C_in + C_out * _LANE)
    vmem_limit = int(min((vmem_cap * 9) // 10,
                         max(32 * 1024 * 1024, footprint + footprint // 4)))

    cost = pl.CostEstimate(
        flops=2 * N * C_in * C_out * HW,
        transcendentals=0,
        bytes_accessed=itemsize * (N * (C_in + C_out) * HW + C_out * C_in + C_out),
    )

    y3d = pl.pallas_call(
        _conv1x1_relu_kernel,
        out_shape=jax.ShapeDtypeStruct((N, C_out, HW), x_nchw.dtype),
        grid_spec=pltpu.PrefetchScalarGridSpec(
            num_scalar_prefetch=0,
            grid=grid,
            in_specs=[
                pl.BlockSpec((bn, C_in, thw), lambda nb, j: (nb, 0, j)),   # x tile
                pl.BlockSpec((C_out, C_in), lambda nb, j: (0, 0)),         # weight
                pl.BlockSpec((C_out, 1), lambda nb, j: (0, 0)),            # bias
            ],
            out_specs=pl.BlockSpec((bn, C_out, thw), lambda nb, j: (nb, 0, j)),
        ),
        compiler_params=pltpu.CompilerParams(
            dimension_semantics=("parallel", "parallel"),
            vmem_limit_bytes=vmem_limit,
        ),
        cost_estimate=cost,
    )(x3d, w2d, b2d)

    return y3d.reshape(N, C_out, H, W)


if __name__ == "__main__":
    # Small shapes consistent with the module (1x1 conv over NCHW).
    N, C_in, C_out, H, Wd = 2, 256, 128, 16, 16

    key = jax.random.PRNGKey(0)
    kx, kw, kb = jax.random.split(key, 3)

    x = jax.random.normal(kx, (N, C_in, H, Wd), dtype=jnp.float32)

    # Parameter init mirroring _init_conv_param (weight ~ N(0, 0.01^2));
    # a small non-zero bias is used so the bias path is actually exercised.
    weight = 0.01 * jax.random.normal(kw, (C_out, C_in, 1, 1), dtype=jnp.float32)
    bias = 0.01 * jax.random.normal(kb, (C_out,), dtype=jnp.float32)

    out = jax.block_until_ready(middle_forward(x, weight, bias))

    # Correctness check vs. plain-JAX reference of Conv2d(1x1) + ReLU.
    ref = jnp.maximum(
        jnp.einsum("nchw,oc->nohw", x, weight.reshape(C_out, C_in))
        + bias[None, :, None, None],
        0.0,
    )
    assert out.shape == (N, C_out, H, Wd)
    assert jnp.allclose(out, ref, atol=1e-4, rtol=1e-4)

    print("KERNEL_OK")
</pallas_src>

<mosaic_0001>
module attributes {stable_mosaic.version = 11 : i64} {
  func.func @_conv1x1_relu_kernel(%arg0: i32, %arg1: i32, %arg2: memref<1x256x256xf32, #tpu.memory_space<vmem>>, %arg3: memref<128x256xf32, #tpu.memory_space<vmem>>, %arg4: memref<128x1xf32, #tpu.memory_space<vmem>>, %arg5: memref<1x128x256xf32, #tpu.memory_space<vmem>>) attributes {dimension_semantics = [#tpu.dimension_semantics<parallel>, #tpu.dimension_semantics<parallel>], iteration_bounds = array<i64: 2, 1>, scalar_prefetch = 0 : i64, scratch_operands = 0 : i64, tpu.core_type = #tpu.core_type<tc>, window_params = [{transform_indices = @transform_0, window_bounds = array<i64: 1, 256, 256>}, {pipeline_mode = #tpu.pipeline_mode<synchronous>, transform_indices = @transform_1, window_bounds = array<i64: 128, 256>}, {pipeline_mode = #tpu.pipeline_mode<synchronous>, transform_indices = @transform_2, window_bounds = array<i64: 128, 1>}, {transform_indices = @transform_3, window_bounds = array<i64: 1, 128, 256>}]} {
    %c0 = arith.constant 0 : index
    %c0_0 = arith.constant 0 : index
    %0 = vector.load %arg3[%c0, %c0_0] : memref<128x256xf32, #tpu.memory_space<vmem>>, vector<128x256xf32>
    %c0_1 = arith.constant 0 : index
    %c0_2 = arith.constant 0 : index
    %1 = vector.load %arg4[%c0_1, %c0_2] : memref<128x1xf32, #tpu.memory_space<vmem>>, vector<128x1xf32>
    %c0_3 = arith.constant 0 : index
    %c0_4 = arith.constant 0 : index
    %c0_5 = arith.constant 0 : index
    %2 = vector.load %arg2[%c0_3, %c0_4, %c0_5] : memref<1x256x256xf32, #tpu.memory_space<vmem>>, vector<1x256x256xf32>
    %3 = vector.shape_cast %2 : vector<1x256x256xf32> to vector<256x256xf32>
    %cst = arith.constant dense<0.000000e+00> : vector<128x256xf32>
    %4 = tpu.matmul %0, %3, %cst {dimension_numbers = #tpu.dot_dimension_numbers<[1], [0], [0], [1], [0, 0, 1, 1], [], []>} : vector<128x256xf32>, vector<256x256xf32>, vector<128x256xf32> -> vector<128x256xf32>
    %5 = vector.broadcast %1 : vector<128x1xf32> to vector<128x256xf32>
    %6 = arith.addf %4, %5 : vector<128x256xf32>
    %cst_6 = arith.constant 0.000000e+00 : f32
    %7 = vector.broadcast %cst_6 : f32 to vector<128x256xf32>
    %8 = arith.maximumf %6, %7 : vector<128x256xf32>
    %c0_7 = arith.constant 0 : index
    %c0_8 = arith.constant 0 : index
    %c0_9 = arith.constant 0 : index
    %9 = vector.load %arg5[%c0_7, %c0_8, %c0_9] : memref<1x128x256xf32, #tpu.memory_space<vmem>>, vector<1x128x256xf32>
    %10 = vector.shape_cast %9 : vector<1x128x256xf32> to vector<128x256xf32>
    %11 = vector.shape_cast %8 : vector<128x256xf32> to vector<1x128x256xf32>
    tpu.vector_store %arg5[%c0_7, %c0_8, %c0_9], %11 {strides = array<i32>} : memref<1x128x256xf32, #tpu.memory_space<vmem>>, vector<1x128x256xf32>,
    return
  }
  func.func @transform_0(%arg0: i32, %arg1: i32) -> (i32, i32, i32) {
    %c0_i32 = arith.constant 0 : i32
    %c0_i32_0 = arith.constant 0 : i32
    return %arg0, %c0_i32, %arg1 : i32, i32, i32
  }
  func.func @transform_1(%arg0: i32, %arg1: i32) -> (i32, i32) {
    %c0_i32 = arith.constant 0 : i32
    %c0_i32_0 = arith.constant 0 : i32
    %c0_i32_1 = arith.constant 0 : i32
    return %c0_i32, %c0_i32_0 : i32, i32
  }
  func.func @transform_2(%arg0: i32, %arg1: i32) -> (i32, i32) {
    %c0_i32 = arith.constant 0 : i32
    %c0_i32_0 = arith.constant 0 : i32
    %c0_i32_1 = arith.constant 0 : i32
    return %c0_i32, %c0_i32_0 : i32, i32
  }
  func.func @transform_3(%arg0: i32, %arg1: i32) -> (i32, i32, i32) {
    %c0_i32 = arith.constant 0 : i32
    %c0_i32_0 = arith.constant 0 : i32
    return %arg0, %c0_i32, %arg1 : i32, i32, i32
  }
}

</mosaic_0001>

<bundles_post_ra>
// kernel: middle_forward.1
= control target key start
LH: loop header
LB: loop body
LE: loop exit
PB: predicated region body
PF: predicated region fallthrough
CT: control target
= control target key end

     0   :  { %s895_s12 = smov 0   ;;  %s897_s13 = smov 0   ;;  %s1196_s0 = inlined_call_operand.vmem [shape: f32[2,256,256], index: 0, kind: input, shape index: {}]   ;;  %s1197_s1 = inlined_call_operand.vmem [shape: f32[128,256], index: 1, kind: input, shape index: {}]   ;;  %s1198_s2 = inlined_call_operand.vmem [shape: f32[128,1], index: 2, kind: input, shape index: {}]   ;;  %s1199_s3 = inlined_call_operand.vmem [shape: f32[2,128,256], index: 3, kind: output, shape index: {}]  }
   0x1   :  { %s899_s14 = smov 0  }
   0x2 LB: > { %s25_s15 = sadd.s32 1, %s868_s13  ;;  %p718_p0 = scmp.ge.s32.totalorder %s872_s14, 1  ;;  %s872_s14 = sphi %s899_s14, %s13_s14   ;;  %s868_s13 = sphi %s897_s13, %s1201_s13   ;;  %s864_s12 = sphi %s895_s12, %s1200_s12  }
   0x3   : > { %p27_p1 = scmp.ge.s32.totalorder %s25_s15, 2  ;;  %p158_p2 = scmp.lt.s32.totalorder %s872_s14, 3 }
   0x5   : > { %s1203_s15 = smov (%p27_p1, %s25_s15), 0  ;;  %p159_p3 = pnand %p718_p0, %p158_p2 }
   0x6   : > { %p191_p4 = scmp.lt.s32.totalorder (!%p159_p3), %s864_s12, 1  ;;  %v211_v0 = vld [vmem:[%s1197_s1 + $0x8] sm:$0xff] (!%p159_p3)  ;;  %v874_v2 = vmov (!%p159_p3), 0   ;;  %v244_v52 = vld [vmem:[%s1198_s2 + $0x10] sm:$0xff] (!%p159_p3)  ;;  %v242_v53 = vld [vmem:[%s1198_s2] sm:$0xff] (!%p159_p3) }
   0x7   : > { %162 = sbr.rel (%p159_p3) target bundleno = 330 (0x14a), region = 32  ;;  %v227_v1 = vld [vmem:[%s1197_s1 + $0x88] sm:$0xff] (!%p159_p3)  ;;  %466 = vmatprep.mubr.f32.mxu0 (!%p159_p3), %v211_v0  ;;  %849 = vset.pattern.permute.xlu1 (!%p159_p3), %v874_v2  ;;  %v245_v55 = vld [vmem:[%s1198_s2 + $0x18] sm:$0xff] (!%p159_p3)  ;;  %v246_v0 = vld [vmem:[%s1198_s2 + $0x20] sm:$0xff] (!%p159_p3) }
   0x8   : > { %514 = vmatprep.mubr.f32.mxu1 (!%p159_p3), %v227_v1  ;;  %848 = vset.pattern.permute.xlu0 (!%p159_p3), %v874_v2  ;;  %v243_v56 = vld [vmem:[%s1198_s2 + $0x8] sm:$0xff] (!%p159_p3) }
   0x9   : > { %334 = vperm.xlu1 (!%p159_p3), %849, %v244_v52   ;;  %324 = vperm.xlu0 (!%p159_p3), %848, %v242_v53   ;;  %v247_v63 = vld [vmem:[%s1198_s2 + $0x28] sm:$0xff] (!%p159_p3)  ;;  %v226_v52 = vld [vmem:[%s1197_s1 + $0x80] sm:$0xff] (!%p159_p3)  ;;  %v213_v53 = vld [vmem:[%s1197_s1 + $0x18] sm:$0xff] (!%p159_p3) }
   0xd   : > { %339 = vperm.xlu1 (!%p159_p3), %849, %v245_v55   ;;  %329 = vperm.xlu0 (!%p159_p3), %848, %v243_v56   ;;  %v212_v55 = vld [vmem:[%s1197_s1 + $0x10] sm:$0xff] (!%p159_p3) }
   0xe   : > { %s1205_s12 = smov (!%p191_p4, %s864_s12), 1  ;;  %v228_v56 = vld [vmem:[%s1197_s1 + $0x90] sm:$0xff] }
   0xf   : > { %s725_s20 = sshll.u32 %s1205_s12, 9  ;;  %s726_s25 = sshll.u32 %s1205_s12, 8 }
  0x10   : > { %s925_s23 = scalar_lea.vmem %s1196_s0, %s725_s20  ;;  %s1143_s28 = scalar_lea.vmem %s1199_s3, %s726_s25 }
  0x11   : > { %v259_v3 = vld [vmem:[%s925_s23 + $0x8] sm:$0xff]  ;;  %v261_v4 = vld [vmem:[%s925_s23 + $0x18] sm:$0xff]  ;;  %v258_v5 = vld [vmem:[%s925_s23] sm:$0xff]  ;;  %349 = vperm.xlu1 %849, %v247_v63   ;;  %344 = vperm.xlu0 %848, %v246_v0  }
  0x12   : > { %v727_v6 = vpack.c.bf16 %v261_v4, %v259_v3  ;;  %v260_v7 = vld [vmem:[%s925_s23 + $0x10] sm:$0xff]  ;;  %v263_v8 = vld [vmem:[%s925_s23 + $0x28] sm:$0xff]  ;;  %v265_v9 = vld [vmem:[%s925_s23 + $0x38] sm:$0xff] }
  0x13   : > { %v729_v10 = vpack.c.bf16 %v260_v7, %v258_v5  ;;  %v731_v11 = vpack.c.bf16 %v265_v9, %v263_v8  ;;  %v262_v12 = vld [vmem:[%s925_s23 + $0x20] sm:$0xff]  ;;  %v264_v13 = vld [vmem:[%s925_s23 + $0x30] sm:$0xff]  ;;  %v267_v14 = vld [vmem:[%s925_s23 + $0x48] sm:$0xff] }
  0x14   : > { %728 = vmatprep.subr.bf16.mxu0 %v727_v6  ;;  %791 = vmatprep.subr.bf16.mxu1 %v727_v6  ;;  %v269_v15 = vld [vmem:[%s925_s23 + $0x58] sm:$0xff]  ;;  %v733_v16 = vpack.c.bf16 %v264_v13, %v262_v12  ;;  %v266_v18 = vld [vmem:[%s925_s23 + $0x40] sm:$0xff]  ;;  %v268_v19 = vld [vmem:[%s925_s23 + $0x50] sm:$0xff] }
  0x15   : > { %730 = vmatpush1.bf16.msra.mxu0 %v729_v10  ;;  %807 = vmatpush1.bf16.msra.mxu1 %v729_v10  ;;  %v735_v17 = vpack.c.bf16 %v269_v15, %v267_v14  ;;  %v271_v20 = vld [vmem:[%s925_s23 + $0x68] sm:$0xff]  ;;  %v273_v21 = vld [vmem:[%s925_s23 + $0x78] sm:$0xff]  ;;  %v737_v22 = vpack.c.bf16 %v268_v19, %v266_v18  ;;  %v270_v24 = vld [vmem:[%s925_s23 + $0x60] sm:$0xff] }
  0x16   : > { %732 = vmatprep.subr.bf16.mxu0 %v731_v11  ;;  %792 = vmatprep.subr.bf16.mxu1 %v731_v11  ;;  %v739_v23 = vpack.c.bf16 %v273_v21, %v271_v20  ;;  %v272_v25 = vld [vmem:[%s925_s23 + $0x70] sm:$0xff]  ;;  %v275_v26 = vld [vmem:[%s925_s23 + $0x88] sm:$0xff]  ;;  %v277_v27 = vld [vmem:[%s925_s23 + $0x98] sm:$0xff] }
  0x17   : > { %v741_v28 = vpack.c.bf16 %v272_v25, %v270_v24  ;;  %v743_v29 = vpack.c.bf16 %v277_v27, %v275_v26  ;;  %v274_v30 = vld [vmem:[%s925_s23 + $0x80] sm:$0xff]  ;;  %v276_v31 = vld [vmem:[%s925_s23 + $0x90] sm:$0xff]  ;;  %v279_v32 = vld [vmem:[%s925_s23 + $0xa8] sm:$0xff] }
  0x18   : > { %v281_v33 = vld [vmem:[%s925_s23 + $0xb8] sm:$0xff]  ;;  %v745_v34 = vpack.c.bf16 %v276_v31, %v274_v30  ;;  %v278_v36 = vld [vmem:[%s925_s23 + $0xa0] sm:$0xff]  ;;  %v280_v37 = vld [vmem:[%s925_s23 + $0xb0] sm:$0xff] }
  0x19   : > { %734 = vmatpush1.bf16.msra.mxu0 %v733_v16  ;;  %808 = vmatpush1.bf16.msra.mxu1 %v733_v16  ;;  %v747_v35 = vpack.c.bf16 %v281_v33, %v279_v32  ;;  %v283_v38 = vld [vmem:[%s925_s23 + $0xc8] sm:$0xff]  ;;  %v285_v39 = vld [vmem:[%s925_s23 + $0xd8] sm:$0xff]  ;;  %v749_v40 = vpack.c.bf16 %v280_v37, %v278_v36  ;;  %v282_v42 = vld [vmem:[%s925_s23 + $0xc0] sm:$0xff] }
  0x1a   : > { %736 = vmatprep.subr.bf16.mxu0 %v735_v17  ;;  %793 = vmatprep.subr.bf16.mxu1 %v735_v17  ;;  %v751_v41 = vpack.c.bf16 %v285_v39, %v283_v38  ;;  %v284_v43 = vld [vmem:[%s925_s23 + $0xd0] sm:$0xff]  ;;  %v287_v44 = vld [vmem:[%s925_s23 + $0xe8] sm:$0xff]  ;;  %v289_v45 = vld [vmem:[%s925_s23 + $0xf8] sm:$0xff] }
  0x1b   : > { %v753_v46 = vpack.c.bf16 %v284_v43, %v282_v42  ;;  %v755_v47 = vpack.c.bf16 %v289_v45, %v287_v44  ;;  %v286_v48 = vld [vmem:[%s925_s23 + $0xe0] sm:$0xff]  ;;  %v288_v49 = vld [vmem:[%s925_s23 + $0xf0] sm:$0xff]  ;;  %v291_v50 = vld [vmem:[%s925_s23 + $0x108] sm:$0xff] }
  0x1c   : > { %v293_v51 = vld [vmem:[%s925_s23 + $0x118] sm:$0xff]  ;;  %v757_v54 = vpack.c.bf16 %v288_v49, %v286_v48  ;;  %v290_v58 = vld [vmem:[%s925_s23 + $0x100] sm:$0xff]  ;;  %v292_v59 = vld [vmem:[%s925_s23 + $0x110] sm:$0xff] }
  0x1d   : > { %738 = vmatpush1.bf16.msra.mxu0 %v737_v22  ;;  %809 = vmatpush1.bf16.msra.mxu1 %v737_v22  ;;  %v759_v57 = vpack.c.bf16 %v293_v51, %v291_v50  ;;  %v295_v60 = vld [vmem:[%s925_s23 + $0x128] sm:$0xff]  ;;  %v297_v61 = vld [vmem:[%s925_s23 + $0x138] sm:$0xff]  ;;  %v761_v62 = vpack.c.bf16 %v292_v59, %v290_v58  ;;  %v294_v2 = vld [vmem:[%s925_s23 + $0x120] sm:$0xff] }
  0x1e   : > { %740 = vmatprep.subr.bf16.mxu0 %v739_v23  ;;  %794 = vmatprep.subr.bf16.mxu1 %v739_v23  ;;  %v763_v1 = vpack.c.bf16 %v297_v61, %v295_v60  ;;  %v296_v3 = vld [vmem:[%s925_s23 + $0x130] sm:$0xff]  ;;  %v299_v4 = vld [vmem:[%s925_s23 + $0x148] sm:$0xff]  ;;  %v301_v5 = vld [vmem:[%s925_s23 + $0x158] sm:$0xff] }
  0x1f   : > { %v765_v6 = vpack.c.bf16 %v296_v3, %v294_v2  ;;  %v249_v7 = vld [vmem:[%s1198_s2 + $0x38] sm:$0xff]  ;;  %v248_v8 = vld [vmem:[%s1198_s2 + $0x30] sm:$0xff]  ;;  %v767_v9 = vpack.c.bf16 %v301_v5, %v299_v4  ;;  %v298_v10 = vld [vmem:[%s925_s23 + $0x140] sm:$0xff] }
  0x20   : > { %v300_v11 = vld [vmem:[%s925_s23 + $0x150] sm:$0xff]  ;;  %v303_v12 = vld [vmem:[%s925_s23 + $0x168] sm:$0xff]  ;;  %v305_v13 = vld [vmem:[%s925_s23 + $0x178] sm:$0xff]  ;;  %359 = vperm.xlu1 %849, %v249_v7   ;;  %354 = vperm.xlu0 %848, %v248_v8  }
  0x21   : > { %742 = vmatpush1.bf16.msra.mxu0 %v741_v28  ;;  %810 = vmatpush1.bf16.msra.mxu1 %v741_v28  ;;  %v769_v14 = vpack.c.bf16 %v300_v11, %v298_v10  ;;  %v251_v15 = vld [vmem:[%s1198_s2 + $0x48] sm:$0xff]  ;;  %v250_v16 = vld [vmem:[%s1198_s2 + $0x40] sm:$0xff]  ;;  %v771_v17 = vpack.c.bf16 %v305_v13, %v303_v12  ;;  %v304_v19 = vld [vmem:[%s925_s23 + $0x170] sm:$0xff] }
  0x22   : > { %744 = vmatprep.subr.bf16.mxu0 %v743_v29  ;;  %795 = vmatprep.subr.bf16.mxu1 %v743_v29  ;;  %v302_v18 = vld [vmem:[%s925_s23 + $0x160] sm:$0xff]  ;;  %v307_v20 = vld [vmem:[%s925_s23 + $0x188] sm:$0xff]  ;;  %v309_v21 = vld [vmem:[%s925_s23 + $0x198] sm:$0xff] }
  0x23   : > { %v773_v22 = vpack.c.bf16 %v304_v19, %v302_v18  ;;  %v253_v23 = vld [vmem:[%s1198_s2 + $0x58] sm:$0xff]  ;;  %v252_v24 = vld [vmem:[%s1198_s2 + $0x50] sm:$0xff]  ;;  %v775_v25 = vpack.c.bf16 %v309_v21, %v307_v20  ;;  %v306_v26 = vld [vmem:[%s925_s23 + $0x180] sm:$0xff] }
  0x24   : > { %369 = vperm.xlu1 %849, %v251_v15   ;;  %364 = vperm.xlu0 %848, %v250_v16   ;;  %v308_v27 = vld [vmem:[%s925_s23 + $0x190] sm:$0xff]  ;;  %v311_v28 = vld [vmem:[%s925_s23 + $0x1a8] sm:$0xff]  ;;  %v313_v29 = vld [vmem:[%s925_s23 + $0x1b8] sm:$0xff] }
  0x25   : > { %746 = vmatpush1.bf16.msra.mxu0 %v745_v34  ;;  %811 = vmatpush1.bf16.msra.mxu1 %v745_v34  ;;  %v777_v30 = vpack.c.bf16 %v308_v27, %v306_v26  ;;  %v255_v31 = vld [vmem:[%s1198_s2 + $0x68] sm:$0xff]  ;;  %v254_v32 = vld [vmem:[%s1198_s2 + $0x60] sm:$0xff]  ;;  %v779_v33 = vpack.c.bf16 %v313_v29, %v311_v28  ;;  %v317_v37 = vld [vmem:[%s925_s23 + $0x1d8] sm:$0xff] }
  0x26   : > { %748 = vmatprep.subr.bf16.mxu0 %v747_v35  ;;  %796 = vmatprep.subr.bf16.mxu1 %v747_v35  ;;  %v310_v34 = vld [vmem:[%s925_s23 + $0x1a0] sm:$0xff]  ;;  %v312_v35 = vld [vmem:[%s925_s23 + $0x1b0] sm:$0xff]  ;;  %v315_v36 = vld [vmem:[%s925_s23 + $0x1c8] sm:$0xff] }
  0x27   : > { %v781_v38 = vpack.c.bf16 %v312_v35, %v310_v34  ;;  %v257_v39 = vld [vmem:[%s1198_s2 + $0x78] sm:$0xff]  ;;  %v314_v42 = vld [vmem:[%s925_s23 + $0x1c0] sm:$0xff]  ;;  %v316_v43 = vld [vmem:[%s925_s23 + $0x1d0] sm:$0xff] }
  0x28   : > { %379 = vperm.xlu1 %849, %v253_v23   ;;  %374 = vperm.xlu0 %848, %v252_v24   ;;  %v319_v44 = vld [vmem:[%s925_s23 + $0x1e8] sm:$0xff]  ;;  %v321_v45 = vld [vmem:[%s925_s23 + $0x1f8] sm:$0xff]  ;;  %v318_v48 = vld [vmem:[%s925_s23 + $0x1e0] sm:$0xff] }
  0x29   : > { %750 = vmatpush1.bf16.msra.mxu0 %v749_v40  ;;  %812 = vmatpush1.bf16.msra.mxu1 %v749_v40  ;;  %v256_v40 = vld [vmem:[%s1198_s2 + $0x70] sm:$0xff]  ;;  %v210_v51 = vld [vmem:[%s1197_s1] sm:$0xff]  ;;  %v231_v58 = vld [vmem:[%s1197_s1 + $0xa8] sm:$0xff] }
  0x2a   : > { %752 = vmatprep.subr.bf16.mxu0 %v751_v41  ;;  %797 = vmatprep.subr.bf16.mxu1 %v751_v41  ;;  %v783_v41 = vpack.c.bf16 %v317_v37, %v315_v36  ;;  %v320_v49 = vld [vmem:[%s925_s23 + $0x1f0] sm:$0xff]  ;;  %v214_v59 = vld [vmem:[%s1197_s1 + $0x20] sm:$0xff]  ;;  %v217_v61 = vld [vmem:[%s1197_s1 + $0x38] sm:$0xff] }
  0x2b   : > { %v789_v50 = vpack.c.bf16 %v320_v49, %v318_v48  ;;  %v230_v60 = vld [vmem:[%s1197_s1 + $0xa0] sm:$0xff]  ;;  %v216_v63 = vld [vmem:[%s1197_s1 + $0x30] sm:$0xff]  ;;  %v235_v2 = vld [vmem:[%s1197_s1 + $0xc8] sm:$0xff] }
  0x2c   : > { %389 = vperm.xlu1 %849, %v255_v31   ;;  %384 = vperm.xlu0 %848, %v254_v32   ;;  %v232_v0 = vld [vmem:[%s1197_s1 + $0xb0] sm:$0xff]  ;;  %v218_v3 = vld [vmem:[%s1197_s1 + $0x40] sm:$0xff]  ;;  %v221_v5 = vld [vmem:[%s1197_s1 + $0x58] sm:$0xff] }
  0x2d   : > { %754 = vmatpush1.bf16.msra.mxu0 %v753_v46  ;;  %813 = vmatpush1.bf16.msra.mxu1 %v753_v46  ;;  %v785_v46 = vpack.c.bf16 %v316_v43, %v314_v42  ;;  %v234_v4 = vld [vmem:[%s1197_s1 + $0xc0] sm:$0xff]  ;;  %v220_v7 = vld [vmem:[%s1197_s1 + $0x50] sm:$0xff]  ;;  %v239_v10 = vld [vmem:[%s1197_s1 + $0xe8] sm:$0xff] }
  0x2e   : > { %756 = vmatprep.subr.bf16.mxu0 %v755_v47  ;;  %798 = vmatprep.subr.bf16.mxu1 %v755_v47  ;;  %v787_v47 = vpack.c.bf16 %v321_v45, %v319_v44  ;;  %v236_v8 = vld [vmem:[%s1197_s1 + $0xd0] sm:$0xff]  ;;  %v222_v11 = vld [vmem:[%s1197_s1 + $0x60] sm:$0xff]  ;;  %v225_v13 = vld [vmem:[%s1197_s1 + $0x78] sm:$0xff] }
  0x2f   : > { %v238_v12 = vld [vmem:[%s1197_s1 + $0xe0] sm:$0xff]  ;;  %v224_v15 = vld [vmem:[%s1197_s1 + $0x70] sm:$0xff] }
  0x30   : > { %399 = vperm.xlu1 %849, %v257_v39   ;;  %394 = vperm.xlu0 %848, %v256_v40   ;;  %v240_v16 = vld [vmem:[%s1197_s1 + $0xf0] sm:$0xff] }
  0x31   : > { %758 = vmatpush1.bf16.msra.mxu0 %v757_v54  ;;  %814 = vmatpush1.bf16.msra.mxu1 %v757_v54  ;;  %v229_v54 = vld [vmem:[%s1197_s1 + $0x98] sm:$0xff] }
  0x32   : > { %760 = vmatprep.subr.bf16.mxu0 %v759_v57  ;;  %799 = vmatprep.subr.bf16.mxu1 %v759_v57  ;;  %v215_v57 = vld [vmem:[%s1197_s1 + $0x28] sm:$0xff] }
  0x35   : > { %762 = vmatpush1.bf16.msra.mxu0 %v761_v62  ;;  %815 = vmatpush1.bf16.msra.mxu1 %v761_v62  ;;  %v233_v62 = vld [vmem:[%s1197_s1 + $0xb8] sm:$0xff] }
  0x36   : > { %764 = vmatprep.subr.bf16.mxu0 %v763_v1  ;;  %800 = vmatprep.subr.bf16.mxu1 %v763_v1  ;;  %v219_v1 = vld [vmem:[%s1197_s1 + $0x48] sm:$0xff] }
  0x39   : > { %766 = vmatpush1.bf16.msra.mxu0 %v765_v6  ;;  %816 = vmatpush1.bf16.msra.mxu1 %v765_v6  ;;  %v237_v6 = vld [vmem:[%s1197_s1 + $0xd8] sm:$0xff] }
  0x3a   : > { %768 = vmatprep.subr.bf16.mxu0 %v767_v9  ;;  %801 = vmatprep.subr.bf16.mxu1 %v767_v9  ;;  %v223_v9 = vld [vmem:[%s1197_s1 + $0x68] sm:$0xff] }
  0x3d   : > { %770 = vmatpush1.bf16.msra.mxu0 %v769_v14  ;;  %817 = vmatpush1.bf16.msra.mxu1 %v769_v14  ;;  %v241_v14 = vld [vmem:[%s1197_s1 + $0xf8] sm:$0xff] }
  0x3e   : > { %772 = vmatprep.subr.bf16.mxu0 %v771_v17  ;;  %802 = vmatprep.subr.bf16.mxu1 %v771_v17 }
  0x41   : > { %774 = vmatpush1.bf16.msra.mxu0 %v773_v22  ;;  %818 = vmatpush1.bf16.msra.mxu1 %v773_v22 }
  0x42   : > { %776 = vmatprep.subr.bf16.mxu0 %v775_v25  ;;  %803 = vmatprep.subr.bf16.mxu1 %v775_v25 }
  0x45   : > { %778 = vmatpush1.bf16.msra.mxu0 %v777_v30  ;;  %819 = vmatpush1.bf16.msra.mxu1 %v777_v30 }
  0x46   : > { %780 = vmatprep.subr.bf16.mxu0 %v779_v33  ;;  %804 = vmatprep.subr.bf16.mxu1 %v779_v33 }
  0x49   : > { %782 = vmatpush1.bf16.msra.mxu0 %v781_v38  ;;  %820 = vmatpush1.bf16.msra.mxu1 %v781_v38 }
  0x4a   : > { %784 = vmatprep.subr.bf16.mxu0 %v783_v41  ;;  %805 = vmatprep.subr.bf16.mxu1 %v783_v41 }
  0x4d   : > { %786 = vmatpush1.bf16.msra.mxu0 %v785_v46  ;;  %821 = vmatpush1.bf16.msra.mxu1 %v785_v46 }
  0x4e   : > { %788 = vmatprep.subr.bf16.mxu0 %v787_v47  ;;  %806 = vmatprep.subr.bf16.mxu1 %v787_v47 }
  0x51   : > { %790 = vmatpush1.bf16.msra.mxu0 %v789_v50  ;;  %822 = vmatpush1.bf16.msra.mxu1 %v789_v50 }
  0x54   : > { %467 = vmatmul.mubr.f32.vlgmr.msra.gmra.mrb[0].mxu0 %v210_v51  ;;  %515 = vmatmul.mubr.f32.vlgmr.msra.gmra.mrb[0].mxu1 %v226_v52 }
  0x55   : > { %472 = vmatprep.mubr.f32.mxu0 %v213_v53  ;;  %520 = vmatprep.mubr.f32.mxu1 %v229_v54 }
  0x58   : > { %473 = vmatmul.mubr.f32.gmra.mrb[2].mxu0 %v212_v55  ;;  %521 = vmatmul.mubr.f32.gmra.mrb[2].mxu1 %v228_v56 }
  0x59   : > { %478 = vmatprep.mubr.f32.mxu0 %v215_v57  ;;  %526 = vmatprep.mubr.f32.mxu1 %v231_v58 }
  0x5c   : > { %479 = vmatmul.mubr.f32.gmra.mrb[4].mxu0 %v214_v59  ;;  %527 = vmatmul.mubr.f32.gmra.mrb[4].mxu1 %v230_v60 }
  0x5d   : > { %484 = vmatprep.mubr.f32.mxu0 %v217_v61  ;;  %532 = vmatprep.mubr.f32.mxu1 %v233_v62 }
  0x60   : > { %485 = vmatmul.mubr.f32.gmra.mrb[6].mxu0 %v216_v63  ;;  %533 = vmatmul.mubr.f32.gmra.mrb[6].mxu1 %v232_v0 }
  0x61   : > { %490 = vmatprep.mubr.f32.mxu0 %v219_v1  ;;  %538 = vmatprep.mubr.f32.mxu1 %v235_v2 }
  0x64   : > { %491 = vmatmul.mubr.f32.gmra.mrb[8].mxu0 %v218_v3  ;;  %539 = vmatmul.mubr.f32.gmra.mrb[8].mxu1 %v234_v4 }
  0x65   : > { %496 = vmatprep.mubr.f32.mxu0 %v221_v5  ;;  %544 = vmatprep.mubr.f32.mxu1 %v237_v6 }
  0x68   : > { %497 = vmatmul.mubr.f32.gmra.mrb[10].mxu0 %v220_v7  ;;  %545 = vmatmul.mubr.f32.gmra.mrb[10].mxu1 %v236_v8 }
  0x69   : > { %502 = vmatprep.mubr.f32.mxu0 %v223_v9  ;;  %550 = vmatprep.mubr.f32.mxu1 %v239_v10 }
  0x6c   : > { %503 = vmatmul.mubr.f32.gmra.mrb[12].mxu0 %v222_v11  ;;  %551 = vmatmul.mubr.f32.gmra.mrb[12].mxu1 %v238_v12 }
  0x6d   : > { %508 = vmatprep.mubr.f32.mxu0 %v225_v13  ;;  %556 = vmatprep.mubr.f32.mxu1 %v241_v14 }
  0x70   : > { %509 = vmatmul.mubr.f32.gmra.mrb[14].mxu0 %v224_v15  ;;  %557 = vmatmul.mubr.f32.gmra.mrb[14].mxu1 %v240_v16 }
  0x88   : > { %v325_v17 = vpop.permute.xlu0 %324  ;;  %v335_v18 = vpop.permute.xlu1 %334 }
  0x8c   : > { %v330_v19 = vpop.permute.xlu0 %329  ;;  %v1129_v20 = vpop.permute.xlu1 %339 }
  0x90   : > { %v1131_v21 = vpop.permute.xlu0 %344  ;;  %v1133_v22 = vpop.permute.xlu1 %349 }
  0x9f   : > { %v1135_v23 = vpop.permute.xlu0 %354  ;;  %v1137_v24 = vpop.permute.xlu1 %359 }
  0xa3   : > { %v365_v25 = vpop.permute.xlu0 %364  ;;  %v370_v34 = vpop.permute.xlu1 %369 }
  0xa7   : > { %v375_v47 = vpop.permute.xlu0 %374  ;;  %v380_v60 = vpop.permute.xlu1 %379 }
  0xab   : > { %v385_v9 = vpop.permute.xlu0 %384 }
 0x127   : > { %v468_v26 = vpop.f32.mrb[0].mxu0  ;;  %v516_v27 = vpop.f32.mrb[0].mxu1 }
 0x128   : > { %v469_v28 = vadd.f32 %v468_v26, %v325_v17  ;;  %v517_v29 = vadd.f32 %v516_v27, %v365_v25  ;;  %v470_v30 = vpop.f32.mrb[1].mxu0  ;;  %v518_v31 = vpop.f32.mrb[1].mxu1 }
 0x129   : > { %v471_v32 = vadd.f32 %v470_v30, %v325_v17  ;;  %v519_v33 = vadd.f32 %v518_v31, %v365_v25  ;;  %v390_v26 = vpop.permute.xlu1 %389 }
 0x12a   : > { %v563_v35 = vmax.f32 %v469_v28, 0.0  ;;  %v579_v36 = vmax.f32 %v517_v29, 0.0 }
 0x12b   : > { %v564_v37 = vmax.f32 %v471_v32, 0.0  ;;  %v580_v38 = vmax.f32 %v519_v33, 0.0  ;;  %v474_v39 = vpop.f32.mrb[2].mxu0  ;;  %v522_v40 = vpop.f32.mrb[2].mxu1 }
 0x12c   : > { %595 = vst [vmem:[%s1143_s28] sm:$0xff] %v563_v35  ;;  %611 = vst [vmem:[%s1143_s28 + $0x80] sm:$0xff] %v579_v36  ;;  %v475_v41 = vadd.f32 %v474_v39, %v330_v19  ;;  %v523_v42 = vadd.f32 %v522_v40, %v370_v34  ;;  %v476_v43 = vpop.f32.mrb[3].mxu0  ;;  %v524_v44 = vpop.f32.mrb[3].mxu1 }
 0x12d   : > { %596 = vst [vmem:[%s1143_s28 + $0x8] sm:$0xff] %v564_v37  ;;  %612 = vst [vmem:[%s1143_s28 + $0x88] sm:$0xff] %v580_v38  ;;  %v477_v45 = vadd.f32 %v476_v43, %v330_v19  ;;  %v525_v46 = vadd.f32 %v524_v44, %v370_v34  ;;  %v395_v38 = vpop.permute.xlu0 %394 }
 0x12e   : > { %v565_v48 = vmax.f32 %v475_v41, 0.0  ;;  %v581_v49 = vmax.f32 %v523_v42, 0.0 }
 0x12f   : > { %v566_v50 = vmax.f32 %v477_v45, 0.0  ;;  %v582_v51 = vmax.f32 %v525_v46, 0.0  ;;  %v480_v52 = vpop.f32.mrb[4].mxu0  ;;  %v528_v53 = vpop.f32.mrb[4].mxu1 }
 0x130   : > { %597 = vst [vmem:[%s1143_s28 + $0x10] sm:$0xff] %v565_v48  ;;  %613 = vst [vmem:[%s1143_s28 + $0x90] sm:$0xff] %v581_v49  ;;  %v481_v54 = vadd.f32 %v480_v52, %v335_v18  ;;  %v529_v55 = vadd.f32 %v528_v53, %v375_v47  ;;  %v482_v56 = vpop.f32.mrb[5].mxu0  ;;  %v530_v57 = vpop.f32.mrb[5].mxu1 }
 0x131   : > { %598 = vst [vmem:[%s1143_s28 + $0x18] sm:$0xff] %v566_v50  ;;  %614 = vst [vmem:[%s1143_s28 + $0x98] sm:$0xff] %v582_v51  ;;  %v483_v58 = vadd.f32 %v482_v56, %v335_v18  ;;  %v531_v59 = vadd.f32 %v530_v57, %v375_v47  ;;  %v400_v50 = vpop.permute.xlu1 %399 }
 0x132   : > { %v567_v61 = vmax.f32 %v481_v54, 0.0  ;;  %v583_v62 = vmax.f32 %v529_v55, 0.0 }
 0x133   : > { %v568_v63 = vmax.f32 %v483_v58, 0.0  ;;  %v584_v0 = vmax.f32 %v531_v59, 0.0  ;;  %v486_v1 = vpop.f32.mrb[6].mxu0  ;;  %v534_v2 = vpop.f32.mrb[6].mxu1 }
 0x134   : > { %599 = vst [vmem:[%s1143_s28 + $0x20] sm:$0xff] %v567_v61  ;;  %615 = vst [vmem:[%s1143_s28 + $0xa0] sm:$0xff] %v583_v62  ;;  %v487_v3 = vadd.f32 %v486_v1, %v1129_v20  ;;  %v535_v4 = vadd.f32 %v534_v2, %v380_v60  ;;  %v488_v5 = vpop.f32.mrb[7].mxu0  ;;  %v536_v6 = vpop.f32.mrb[7].mxu1 }
 0x135   : > { %600 = vst [vmem:[%s1143_s28 + $0x28] sm:$0xff] %v568_v63  ;;  %616 = vst [vmem:[%s1143_s28 + $0xa8] sm:$0xff] %v584_v0  ;;  %v489_v7 = vadd.f32 %v488_v5, %v1129_v20  ;;  %v537_v8 = vadd.f32 %v536_v6, %v380_v60 }
 0x136   : > { %v569_v10 = vmax.f32 %v487_v3, 0.0  ;;  %v585_v11 = vmax.f32 %v535_v4, 0.0 }
 0x137   : > { %v570_v12 = vmax.f32 %v489_v7, 0.0  ;;  %v586_v13 = vmax.f32 %v537_v8, 0.0  ;;  %v492_v14 = vpop.f32.mrb[8].mxu0  ;;  %v540_v15 = vpop.f32.mrb[8].mxu1 }
 0x138   : > { %601 = vst [vmem:[%s1143_s28 + $0x30] sm:$0xff] %v569_v10  ;;  %617 = vst [vmem:[%s1143_s28 + $0xb0] sm:$0xff] %v585_v11  ;;  %v493_v16 = vadd.f32 %v492_v14, %v1131_v21  ;;  %v541_v17 = vadd.f32 %v540_v15, %v385_v9  ;;  %v494_v18 = vpop.f32.mrb[9].mxu0  ;;  %v542_v19 = vpop.f32.mrb[9].mxu1 }
 0x139   : > { %602 = vst [vmem:[%s1143_s28 + $0x38] sm:$0xff] %v570_v12  ;;  %618 = vst [vmem:[%s1143_s28 + $0xb8] sm:$0xff] %v586_v13  ;;  %v495_v20 = vadd.f32 %v494_v18, %v1131_v21  ;;  %v543_v25 = vadd.f32 %v542_v19, %v385_v9 }
 0x13a   : > { %v571_v27 = vmax.f32 %v493_v16, 0.0  ;;  %v587_v28 = vmax.f32 %v541_v17, 0.0 }
 0x13b   : > { %v572_v29 = vmax.f32 %v495_v20, 0.0  ;;  %v588_v30 = vmax.f32 %v543_v25, 0.0  ;;  %v498_v31 = vpop.f32.mrb[10].mxu0  ;;  %v546_v32 = vpop.f32.mrb[10].mxu1 }
 0x13c   : > { %603 = vst [vmem:[%s1143_s28 + $0x40] sm:$0xff] %v571_v27  ;;  %619 = vst [vmem:[%s1143_s28 + $0xc0] sm:$0xff] %v587_v28  ;;  %v499_v33 = vadd.f32 %v498_v31, %v1133_v22  ;;  %v547_v34 = vadd.f32 %v546_v32, %v390_v26  ;;  %v500_v35 = vpop.f32.mrb[11].mxu0  ;;  %v548_v36 = vpop.f32.mrb[11].mxu1 }
 0x13d   : > { %604 = vst [vmem:[%s1143_s28 + $0x48] sm:$0xff] %v572_v29  ;;  %620 = vst [vmem:[%s1143_s28 + $0xc8] sm:$0xff] %v588_v30  ;;  %v501_v21 = vadd.f32 %v500_v35, %v1133_v22  ;;  %v549_v37 = vadd.f32 %v548_v36, %v390_v26 }
 0x13e   : > { %v573_v39 = vmax.f32 %v499_v33, 0.0  ;;  %v589_v40 = vmax.f32 %v547_v34, 0.0 }
 0x13f   : > { %v574_v41 = vmax.f32 %v501_v21, 0.0  ;;  %v590_v42 = vmax.f32 %v549_v37, 0.0  ;;  %v504_v43 = vpop.f32.mrb[12].mxu0  ;;  %v552_v44 = vpop.f32.mrb[12].mxu1 }
 0x140   : > { %605 = vst [vmem:[%s1143_s28 + $0x50] sm:$0xff] %v573_v39  ;;  %621 = vst [vmem:[%s1143_s28 + $0xd0] sm:$0xff] %v589_v40  ;;  %v505_v45 = vadd.f32 %v504_v43, %v1135_v23  ;;  %v553_v46 = vadd.f32 %v552_v44, %v395_v38  ;;  %v506_v47 = vpop.f32.mrb[13].mxu0  ;;  %v554_v48 = vpop.f32.mrb[13].mxu1 }
 0x141   : > { %606 = vst [vmem:[%s1143_s28 + $0x58] sm:$0xff] %v574_v41  ;;  %622 = vst [vmem:[%s1143_s28 + $0xd8] sm:$0xff] %v590_v42  ;;  %v507_v22 = vadd.f32 %v506_v47, %v1135_v23  ;;  %v555_v49 = vadd.f32 %v554_v48, %v395_v38 }
 0x142   : > { %v575_v51 = vmax.f32 %v505_v45, 0.0  ;;  %v591_v52 = vmax.f32 %v553_v46, 0.0 }
 0x143   : > { %v576_v53 = vmax.f32 %v507_v22, 0.0  ;;  %v592_v54 = vmax.f32 %v555_v49, 0.0  ;;  %v510_v55 = vpop.f32.mrb[14].mxu0  ;;  %v558_v56 = vpop.f32.mrb[14].mxu1 }
 0x144   : > { %607 = vst [vmem:[%s1143_s28 + $0x60] sm:$0xff] %v575_v51  ;;  %623 = vst [vmem:[%s1143_s28 + $0xe0] sm:$0xff] %v591_v52  ;;  %v511_v57 = vadd.f32 %v510_v55, %v1137_v24  ;;  %v559_v58 = vadd.f32 %v558_v56, %v400_v50  ;;  %v512_v59 = vpop.f32.mrb[15].mxu0  ;;  %v560_v23 = vpop.f32.mrb[15].mxu1 }
 0x145   : > { %608 = vst [vmem:[%s1143_s28 + $0x68] sm:$0xff] %v576_v53  ;;  %624 = vst [vmem:[%s1143_s28 + $0xe8] sm:$0xff] %v592_v54  ;;  %v513_v60 = vadd.f32 %v512_v59, %v1137_v24  ;;  %v561_v61 = vadd.f32 %v560_v23, %v400_v50 }
 0x146   : > { %v577_v62 = vmax.f32 %v511_v57, 0.0  ;;  %v593_v63 = vmax.f32 %v559_v58, 0.0 }
 0x147   : > { %v578_v0 = vmax.f32 %v513_v60, 0.0  ;;  %v594_v1 = vmax.f32 %v561_v61, 0.0 }
 0x148   : > { %609 = vst [vmem:[%s1143_s28 + $0x70] sm:$0xff] %v577_v62  ;;  %625 = vst [vmem:[%s1143_s28 + $0xf0] sm:$0xff] %v593_v63 }
 0x149   : > { %610 = vst [vmem:[%s1143_s28 + $0x78] sm:$0xff] %v578_v0  ;;  %626 = vst [vmem:[%s1143_s28 + $0xf8] sm:$0xff] %v594_v1 }
 0x14a PF: > { %s13_s14 = sadd.s32 1, %s872_s14   ;;  %s1200_s12 = smov %s868_s13 }
 0x14b   : > { %p10_p5 = scmp.ge.s32.totalorder %s13_s14, 4   ;;  %s1201_s13 = smov %s1203_s15 }
 0x14d   :  { %12 = sbr.rel (!%p10_p5) target bundleno = 2 (0x2), region = 62 }

</bundles_post_ra>
